<compile_context>
chip_gen: v7x
topology: tpu7x:2x2x1
jax: 0.10.0
libtpu: 0.0.40
codegen_flags: <defaults>
</compile_context>

<pallas_src>
import functools

import jax
import jax.numpy as jnp
from jax.experimental import pallas as pl
from jax.experimental.pallas import tpu as pltpu

LANE = 128
EPS = 1e-5


def _round_up(n, m):
    return ((n + m - 1) // m) * m


def _pick_tile(n_pad, target):
    """Largest multiple of 128 <= target that divides n_pad (n_pad % 128 == 0)."""
    t = max((min(target, n_pad) // LANE) * LANE, LANE)
    while n_pad % t != 0:
        t -= LANE
    return t


# ---------------------------------------------------------------------------
# Kernel 1: hn = LayerNorm( relu( A @ (X W1) + b1 ) )
# Grid = (row tiles i over A's rows, reduction tiles k over A's columns).
# XW1 is VMEM-resident; only A is streamed. acc_ref holds the f32 partial sum;
# bias/ReLU/LayerNorm happen in the k==last finalize path.
# ---------------------------------------------------------------------------
def gcn_hidden_kernel(a_ref, xw1_ref, b1_ref, gamma_ref, beta_ref,
                      hn_ref, acc_ref, *, hidden_true, tk):
    k = pl.program_id(1)
    start = pl.multiple_of(k * tk, tk)
    xw1_blk = xw1_ref[pl.ds(start, tk), :]                 # [TK, h_pad] bf16 (resident)
    prod = jnp.dot(a_ref[...], xw1_blk,
                   preferred_element_type=jnp.float32)     # bf16 x bf16 -> f32

    @pl.when(k == 0)
    def _():
        acc_ref[...] = prod                                # first partial: direct write

    @pl.when(k != 0)
    def _():
        acc_ref[...] += prod

    @pl.when(k == pl.num_programs(1) - 1)
    def _():
        h = jnp.maximum(acc_ref[...] + b1_ref[...], 0.0)   # [TM, h_pad] f32
        # LayerNorm over the TRUE hidden width only; padded lanes of h are zero
        # because W1/b1 padding is zero.
        lane = jax.lax.broadcasted_iota(jnp.int32, (1, h.shape[-1]), 1)
        valid = lane < hidden_true                         # (1, h_pad) row mask
        inv_h = 1.0 / float(hidden_true)
        mean = jnp.sum(h, axis=-1, keepdims=True) * inv_h
        centered = jnp.where(valid, h - mean, 0.0)
        var = jnp.sum(centered * centered, axis=-1, keepdims=True) * inv_h
        hn = centered * jax.lax.rsqrt(var + EPS) * gamma_ref[...] + beta_ref[...]
        hn_ref[...] = hn.astype(hn_ref.dtype)


# ---------------------------------------------------------------------------
# Kernel 2: [mu | logvar] = (A @ hn) @ [Wmu|Wlv] + [bmu|blv]
# Same accumulate-over-k structure; hn is VMEM-resident; single lane-dense
# fused output slab, split in the wrapper.
# ---------------------------------------------------------------------------
def gcn_heads_kernel(a_ref, hn_ref, wf_ref, bf_ref, out_ref, acc_ref, *, tk):
    k = pl.program_id(1)
    start = pl.multiple_of(k * tk, tk)
    hn_blk = hn_ref[pl.ds(start, tk), :]                   # [TK, h_pad] bf16 (resident)
    prod = jnp.dot(a_ref[...], hn_blk,
                   preferred_element_type=jnp.float32)

    @pl.when(k == 0)
    def _():
        acc_ref[...] = prod

    @pl.when(k != 0)
    def _():
        acc_ref[...] += prod

    @pl.when(k == pl.num_programs(1) - 1)
    def _():
        ah = acc_ref[...].astype(jnp.bfloat16)             # bf16 finalize matmul
        out_ref[...] = (jnp.dot(ah, wf_ref[...],
                                preferred_element_type=jnp.float32)
                        + bf_ref[...])


def build_normalized_adjacency_padded(edge_index, num_nodes, n_pad):
    """Padded bf16 D^{-1/2}(A+I)D^{-1/2} emitted directly (no extra pad pass)."""
    # TODO(synk): for large sparse graphs replace the dense adjacency with a
    # CSR/gather formulation via PrefetchScalarGridSpec (O(E) instead of O(N^2)).
    src, dst = edge_index[0], edge_index[1]
    A = jnp.zeros((n_pad, n_pad), jnp.float32)
    A = A.at[dst, src].add(1.0)                            # messages flow src -> dst
    diag = jnp.arange(num_nodes, dtype=jnp.int32)
    A = A.at[diag, diag].add(1.0)                          # self loops (real nodes only)
    deg = jnp.sum(A, axis=1)
    dinv = jnp.where(deg > 0, jax.lax.rsqrt(jnp.maximum(deg, 1e-12)), 0.0)
    return (dinv[:, None] * A * dinv[None, :]).astype(jnp.bfloat16)


def encoder_forward(x, edge_index, params, *, tm_target=256, tk_target=2048):
    """Fused VGAE encoder forward via two tiled Pallas kernels."""
    n, f = x.shape
    hidden = params["w1"].shape[1]
    out_ch = params["wmu"].shape[1]

    # ---- geometry: pad N only to 128; TM/TK chosen to divide n_pad ----------
    n_pad = _round_up(n, LANE)
    h_pad = _round_up(hidden, LANE)
    o_pad = _round_up(2 * out_ch, LANE)                    # fused mu|logvar lane width

    tm = _pick_tile(n_pad, tm_target)
    if n_pad // tm == 1 and tm > LANE:                     # >=2 row tiles for v7x megacore
        tm = _pick_tile(n_pad, tm // 2)
    tk = _pick_tile(n_pad, tk_target)
    grid = (n_pad // tm, n_pad // tk)

    # ---- plain-JAX glue -----------------------------------------------------
    a_p = build_normalized_adjacency_padded(edge_index, n, n_pad)      # bf16, padded

    # Precompute XW1 = X @ W1 (tiny) and pad lane-dense bf16.
    # TODO(synk): fp8 A on v7x / int8 A on v5e-v6e would halve the dominant
    # HBM stream; kept bf16 here for portability.
    xw1 = (x.astype(jnp.float32) @ params["w1"]).astype(jnp.bfloat16)
    xw1_p = jnp.zeros((n_pad, h_pad), jnp.bfloat16).at[:n, :hidden].set(xw1)

    b1_p = jnp.zeros((1, h_pad), jnp.float32).at[:, :hidden].set(params["b1"])
    g_p = jnp.zeros((1, h_pad), jnp.float32).at[:, :hidden].set(params["gamma"])
    be_p = jnp.zeros((1, h_pad), jnp.float32).at[:, :hidden].set(params["beta"])

    wf = jnp.concatenate([params["wmu"], params["wlv"]], axis=1)       # [H, 2*out]
    bf = jnp.concatenate([params["bmu"], params["blv"]], axis=1)       # [1, 2*out]
    wf_p = jnp.zeros((h_pad, o_pad), jnp.bfloat16).at[:hidden, :2 * out_ch].set(
        wf.astype(jnp.bfloat16))
    bf_p = jnp.zeros((1, o_pad), jnp.float32).at[:, :2 * out_ch].set(bf)

    # ---- VMEM budget / compiler params --------------------------------------
    vmem_need = (2 * tm * tk * 2                 # A double buffer (bf16)
                 + n_pad * h_pad * 2             # resident XW1 / hn (bf16)
                 + tm * h_pad * 4                # f32 accumulator
                 + 2 * tm * max(h_pad * 2, o_pad * 4)   # output double buffer
                 + h_pad * o_pad * 2 + 4 * h_pad * 4)   # resident weights/bias
    vmem_limit = int(min(48 * 2**20, max(32 * 2**20, 2 * vmem_need)))

    cparams = pltpu.CompilerParams(
        dimension_semantics=("parallel", "arbitrary"),
        vmem_limit_bytes=vmem_limit,
    )
    const = lambda i, k: (0, 0)

    cost1 = pl.CostEstimate(
        flops=2 * n_pad * n_pad * h_pad,
        transcendentals=n_pad,
        bytes_accessed=n_pad * n_pad * 2 + 2 * n_pad * h_pad * 2,
    )
    cost2 = pl.CostEstimate(
        flops=2 * n_pad * n_pad * h_pad + 2 * n_pad * h_pad * o_pad,
        transcendentals=0,
        bytes_accessed=n_pad * n_pad * 2 + n_pad * h_pad * 2 + n_pad * o_pad * 4,
    )

    # ---- stage 1: hn = LN(relu(A @ XW1 + b1)) --------------------------------
    hn = pl.pallas_call(
        functools.partial(gcn_hidden_kernel, hidden_true=hidden, tk=tk),
        out_shape=jax.ShapeDtypeStruct((n_pad, h_pad), jnp.bfloat16),
        grid_spec=pltpu.PrefetchScalarGridSpec(
            num_scalar_prefetch=0,
            grid=grid,
            in_specs=[
                pl.BlockSpec((tm, tk), lambda i, k: (i, k)),     # A (streamed)
                pl.BlockSpec((n_pad, h_pad), const),             # XW1 (resident)
                pl.BlockSpec((1, h_pad), const),                 # b1
                pl.BlockSpec((1, h_pad), const),                 # gamma
                pl.BlockSpec((1, h_pad), const),                 # beta
            ],
            out_specs=pl.BlockSpec((tm, h_pad), lambda i, k: (i, 0)),
            scratch_shapes=[pltpu.VMEM((tm, h_pad), jnp.float32)],
        ),
        compiler_params=cparams,
        cost_estimate=cost1,
    )(a_p, xw1_p, b1_p, g_p, be_p)

    # ---- stage 2: [mu | logvar] = (A @ hn) @ [Wmu|Wlv] + [bmu|blv] -----------
    fused = pl.pallas_call(
        functools.partial(gcn_heads_kernel, tk=tk),
        out_shape=jax.ShapeDtypeStruct((n_pad, o_pad), jnp.float32),
        grid_spec=pltpu.PrefetchScalarGridSpec(
            num_scalar_prefetch=0,
            grid=grid,
            in_specs=[
                pl.BlockSpec((tm, tk), lambda i, k: (i, k)),     # A (streamed)
                pl.BlockSpec((n_pad, h_pad), const),             # hn (resident)
                pl.BlockSpec((h_pad, o_pad), const),             # [Wmu|Wlv]
                pl.BlockSpec((1, o_pad), const),                 # [bmu|blv]
            ],
            out_specs=pl.BlockSpec((tm, o_pad), lambda i, k: (i, 0)),
            scratch_shapes=[pltpu.VMEM((tm, h_pad), jnp.float32)],
        ),
        compiler_params=cparams,
        cost_estimate=cost2,
    )(a_p, hn, wf_p, bf_p)

    mu = fused[:n, :out_ch]
    logvar = fused[:n, out_ch:2 * out_ch]
    return mu, logvar


def init_params(key, num_features, hidden_channels, out_channels):
    k1, k2, k3 = jax.random.split(key, 3)

    def glorot(k, fan_in, fan_out):
        limit = jnp.sqrt(6.0 / (fan_in + fan_out))
        return jax.random.uniform(k, (fan_in, fan_out), jnp.float32, -limit, limit)

    return {
        "w1": glorot(k1, num_features, hidden_channels),
        "b1": jnp.zeros((1, hidden_channels), jnp.float32),
        "gamma": jnp.ones((1, hidden_channels), jnp.float32),
        "beta": jnp.zeros((1, hidden_channels), jnp.float32),
        "wmu": glorot(k2, hidden_channels, out_channels),
        "bmu": jnp.zeros((1, out_channels), jnp.float32),
        "wlv": glorot(k3, hidden_channels, out_channels),
        "blv": jnp.zeros((1, out_channels), jnp.float32),
    }


def reference_forward(a_norm, x, p):
    h = jnp.maximum(a_norm @ (x @ p["w1"]) + p["b1"], 0.0)
    mean = jnp.mean(h, axis=-1, keepdims=True)
    var = jnp.mean((h - mean) ** 2, axis=-1, keepdims=True)
    hn = (h - mean) * jax.lax.rsqrt(var + EPS) * p["gamma"] + p["beta"]
    mu = a_norm @ (hn @ p["wmu"]) + p["bmu"]
    lv = a_norm @ (hn @ p["wlv"]) + p["blv"]
    return mu, lv


if __name__ == "__main__":
    num_nodes = 16
    num_features = 8
    hidden_channels = 32
    out_channels = 32

    key = jax.random.PRNGKey(0)
    kx, kp = jax.random.split(key)

    # Deterministic node features and a small undirected ring graph.
    x = jax.random.normal(kx, (num_nodes, num_features), jnp.float32)
    src = jnp.arange(num_nodes, dtype=jnp.int32)
    dst = (src + 1) % num_nodes
    edge_index = jnp.stack(
        [jnp.concatenate([src, dst]), jnp.concatenate([dst, src])], axis=0
    )  # [2, 2N] — both directions (undirected graph)

    params = init_params(kp, num_features, hidden_channels, out_channels)

    mu, logvar = encoder_forward(x, edge_index, params)
    jax.block_until_ready((mu, logvar))

    # Reference in exact f32 (unpadded adjacency). Looser tolerance: adjacency,
    # XW1 and hn feed the MXU in bf16 (accumulation stays f32).
    a_norm_ref = build_normalized_adjacency_padded(
        edge_index, num_nodes, num_nodes).astype(jnp.float32)
    mu_ref, lv_ref = reference_forward(a_norm_ref, x, params)
    assert jnp.allclose(mu, mu_ref, atol=1e-1, rtol=1e-1), "mu mismatch vs reference"
    assert jnp.allclose(logvar, lv_ref, atol=1e-1, rtol=1e-1), "logvar mismatch vs reference"

    # TODO(synk): torch_geometric's LayerNorm default mode='graph' normalizes over
    # all nodes jointly; per-node (torch.nn.LayerNorm-style) normalization is used here.
    print("KERNEL_OK")
</pallas_src>

<mosaic_0001>
module attributes {stable_mosaic.version = 11 : i64} {
  func.func @gcn_hidden_kernel(%arg0: i32, %arg1: i32, %arg2: memref<128x128xbf16, #tpu.memory_space<vmem>>, %arg3: memref<128x128xbf16, #tpu.memory_space<vmem>>, %arg4: memref<1x128xf32, #tpu.memory_space<vmem>>, %arg5: memref<1x128xf32, #tpu.memory_space<vmem>>, %arg6: memref<1x128xf32, #tpu.memory_space<vmem>>, %arg7: memref<128x128xbf16, #tpu.memory_space<vmem>>, %arg8: memref<128x128xf32, #tpu.memory_space<vmem>>) attributes {dimension_semantics = [#tpu.dimension_semantics<parallel>, #tpu.dimension_semantics<arbitrary>], iteration_bounds = array<i64: 1, 1>, scalar_prefetch = 0 : i64, scratch_operands = 1 : i64, tpu.core_type = #tpu.core_type<tc>, window_params = [{transform_indices = @transform_0, window_bounds = array<i64: 128, 128>}, {pipeline_mode = #tpu.pipeline_mode<synchronous>, transform_indices = @transform_1, window_bounds = array<i64: 128, 128>}, {pipeline_mode = #tpu.pipeline_mode<synchronous>, transform_indices = @transform_2, window_bounds = array<i64: 1, 128>}, {pipeline_mode = #tpu.pipeline_mode<synchronous>, transform_indices = @transform_3, window_bounds = array<i64: 1, 128>}, {pipeline_mode = #tpu.pipeline_mode<synchronous>, transform_indices = @transform_4, window_bounds = array<i64: 1, 128>}, {transform_indices = @transform_5, window_bounds = array<i64: 128, 128>}]} {
    %c128_i32 = arith.constant 128 : i32
    %0 = arith.muli %arg1, %c128_i32 : i32
    %1 = tpu.assume_multiple %0, 128 : i32
    %2 = arith.index_cast %1 : i32 to index
    %c0 = arith.constant 0 : index
    %3 = vector.load %arg3[%2, %c0] : memref<128x128xbf16, #tpu.memory_space<vmem>>, vector<128x128xbf16>
    %c0_0 = arith.constant 0 : index
    %c0_1 = arith.constant 0 : index
    %4 = vector.load %arg2[%c0_0, %c0_1] : memref<128x128xbf16, #tpu.memory_space<vmem>>, vector<128x128xbf16>
    %cst = arith.constant dense<0.000000e+00> : vector<128x128xf32>
    %5 = tpu.matmul %4, %3, %cst {dimension_numbers = #tpu.dot_dimension_numbers<[1], [0], [0], [1], [0, 0, 1, 1], [], []>} : vector<128x128xbf16>, vector<128x128xbf16>, vector<128x128xf32> -> vector<128x128xf32>
    %c0_i32 = arith.constant 0 : i32
    %6 = arith.cmpi eq, %arg1, %c0_i32 : i32
    %7 = arith.extui %6 : i1 to i32
    %c0_i32_2 = arith.constant 0 : i32
    %8 = arith.cmpi ne, %7, %c0_i32_2 : i32
    scf.if %8 {
      %c0_7 = arith.constant 0 : index
      %c0_8 = arith.constant 0 : index
      %15 = vector.load %arg8[%c0_7, %c0_8] : memref<128x128xf32, #tpu.memory_space<vmem>>, vector<128x128xf32>
      tpu.vector_store %arg8[%c0_7, %c0_8], %5 {strides = array<i32>} : memref<128x128xf32, #tpu.memory_space<vmem>>, vector<128x128xf32>,
    } else {
    }
    %c0_i32_3 = arith.constant 0 : i32
    %9 = arith.cmpi ne, %arg1, %c0_i32_3 : i32
    %10 = arith.extui %9 : i1 to i32
    %c0_i32_4 = arith.constant 0 : i32
    %11 = arith.cmpi ne, %10, %c0_i32_4 : i32
    scf.if %11 {
      %c0_7 = arith.constant 0 : index
      %c0_8 = arith.constant 0 : index
      %15 = vector.load %arg8[%c0_7, %c0_8] : memref<128x128xf32, #tpu.memory_space<vmem>>, vector<128x128xf32>
      %16 = arith.addf %15, %5 : vector<128x128xf32>
      %c0_9 = arith.constant 0 : index
      %c0_10 = arith.constant 0 : index
      %17 = vector.load %arg8[%c0_9, %c0_10] : memref<128x128xf32, #tpu.memory_space<vmem>>, vector<128x128xf32>
      tpu.vector_store %arg8[%c0_9, %c0_10], %16 {strides = array<i32>} : memref<128x128xf32, #tpu.memory_space<vmem>>, vector<128x128xf32>,
    } else {
    }
    %c0_i32_5 = arith.constant 0 : i32
    %12 = arith.cmpi eq, %arg1, %c0_i32_5 : i32
    %13 = arith.extui %12 : i1 to i32
    %c0_i32_6 = arith.constant 0 : i32
    %14 = arith.cmpi ne, %13, %c0_i32_6 : i32
    scf.if %14 {
      %c0_7 = arith.constant 0 : index
      %c0_8 = arith.constant 0 : index
      %15 = vector.load %arg8[%c0_7, %c0_8] : memref<128x128xf32, #tpu.memory_space<vmem>>, vector<128x128xf32>
      %c0_9 = arith.constant 0 : index
      %c0_10 = arith.constant 0 : index
      %16 = vector.load %arg4[%c0_9, %c0_10] : memref<1x128xf32, #tpu.memory_space<vmem>>, vector<1x128xf32>
      %17 = vector.broadcast %16 : vector<1x128xf32> to vector<128x128xf32>
      %18 = arith.addf %15, %17 : vector<128x128xf32>
      %cst_11 = arith.constant 0.000000e+00 : f32
      %19 = vector.broadcast %cst_11 : f32 to vector<128x128xf32>
      %20 = arith.maximumf %18, %19 : vector<128x128xf32>
      %21 = tpu.iota {dimensions = array<i32: 1>} : vector<1x128xi32>
      %c32_i32 = arith.constant 32 : i32
      %22 = vector.broadcast %c32_i32 : i32 to vector<1x128xi32>
      %23 = arith.cmpi slt, %21, %22 : vector<1x128xi32>
      %cst_12 = arith.constant dense<0.000000e+00> : vector<128xf32>
      %24 = vector.multi_reduction <add>, %20, %cst_12 [1] : vector<128x128xf32> to vector<128xf32>
      %25 = vector.shape_cast %24 : vector<128xf32> to vector<128x1xf32>
      %cst_13 = arith.constant 3.125000e-02 : f32
      %26 = vector.broadcast %cst_13 : f32 to vector<128x1xf32>
      %27 = arith.mulf %25, %26 : vector<128x1xf32>
      %28 = vector.broadcast %27 : vector<128x1xf32> to vector<128x128xf32>
      %29 = arith.subf %20, %28 : vector<128x128xf32>
      %cst_14 = arith.constant 0.000000e+00 : f32
      %30 = vector.shape_cast %23 : vector<1x128xi1> to vector<1x128xi1>
      %31 = vector.broadcast %30 : vector<1x128xi1> to vector<128x128xi1>
      %32 = vector.broadcast %cst_14 : f32 to vector<128x128xf32>
      %33 = arith.select %31, %29, %32 : vector<128x128xi1>, vector<128x128xf32>
      %34 = arith.mulf %33, %33 : vector<128x128xf32>
      %cst_15 = arith.constant dense<0.000000e+00> : vector<128xf32>
      %35 = vector.multi_reduction <add>, %34, %cst_15 [1] : vector<128x128xf32> to vector<128xf32>
      %36 = vector.shape_cast %35 : vector<128xf32> to vector<128x1xf32>
      %cst_16 = arith.constant 3.125000e-02 : f32
      %37 = vector.broadcast %cst_16 : f32 to vector<128x1xf32>
      %38 = arith.mulf %36, %37 : vector<128x1xf32>
      %cst_17 = arith.constant 9.99999974E-6 : f32
      %39 = vector.broadcast %cst_17 : f32 to vector<128x1xf32>
      %40 = arith.addf %38, %39 : vector<128x1xf32>
      %41 = math.rsqrt %40 : vector<128x1xf32>
      %42 = vector.broadcast %41 : vector<128x1xf32> to vector<128x128xf32>
      %43 = arith.mulf %33, %42 : vector<128x128xf32>
      %c0_18 = arith.constant 0 : index
      %c0_19 = arith.constant 0 : index
      %44 = vector.load %arg5[%c0_18, %c0_19] : memref<1x128xf32, #tpu.memory_space<vmem>>, vector<1x128xf32>
      %45 = vector.broadcast %44 : vector<1x128xf32> to vector<128x128xf32>
      %46 = arith.mulf %43, %45 : vector<128x128xf32>
      %c0_20 = arith.constant 0 : index
      %c0_21 = arith.constant 0 : index
      %47 = vector.load %arg6[%c0_20, %c0_21] : memref<1x128xf32, #tpu.memory_space<vmem>>, vector<1x128xf32>
      %48 = vector.broadcast %47 : vector<1x128xf32> to vector<128x128xf32>
      %49 = arith.addf %46, %48 : vector<128x128xf32>
      %50 = arith.truncf %49 : vector<128x128xf32> to vector<128x128xbf16>
      %c0_22 = arith.constant 0 : index
      %c0_23 = arith.constant 0 : index
      %51 = vector.load %arg7[%c0_22, %c0_23] : memref<128x128xbf16, #tpu.memory_space<vmem>>, vector<128x128xbf16>
      tpu.vector_store %arg7[%c0_22, %c0_23], %50 {strides = array<i32>} : memref<128x128xbf16, #tpu.memory_space<vmem>>, vector<128x128xbf16>,
    } else {
    }
    return
  }
  func.func @transform_0(%arg0: i32, %arg1: i32) -> (i32, i32) {
    %c0_i32 = arith.constant 0 : i32
    return %arg0, %arg1 : i32, i32
  }
  func.func @transform_1(%arg0: i32, %arg1: i32) -> (i32, i32) {
    %c0_i32 = arith.constant 0 : i32
    %c0_i32_0 = arith.constant 0 : i32
    %c0_i32_1 = arith.constant 0 : i32
    return %c0_i32, %c0_i32_0 : i32, i32
  }
  func.func @transform_2(%arg0: i32, %arg1: i32) -> (i32, i32) {
    %c0_i32 = arith.constant 0 : i32
    %c0_i32_0 = arith.constant 0 : i32
    %c0_i32_1 = arith.constant 0 : i32
    return %c0_i32, %c0_i32_0 : i32, i32
  }
  func.func @transform_3(%arg0: i32, %arg1: i32) -> (i32, i32) {
    %c0_i32 = arith.constant 0 : i32
    %c0_i32_0 = arith.constant 0 : i32
    %c0_i32_1 = arith.constant 0 : i32
    return %c0_i32, %c0_i32_0 : i32, i32
  }
  func.func @transform_4(%arg0: i32, %arg1: i32) -> (i32, i32) {
    %c0_i32 = arith.constant 0 : i32
    %c0_i32_0 = arith.constant 0 : i32
    %c0_i32_1 = arith.constant 0 : i32
    return %c0_i32, %c0_i32_0 : i32, i32
  }
  func.func @transform_5(%arg0: i32, %arg1: i32) -> (i32, i32) {
    %c0_i32 = arith.constant 0 : i32
    %c0_i32_0 = arith.constant 0 : i32
    return %arg0, %c0_i32 : i32, i32
  }
}

</mosaic_0001>

<bundles_post_ra>
// kernel: tpu_custom_call.1
= control target key start
LH: loop header
LB: loop body
LE: loop exit
PB: predicated region body
PF: predicated region fallthrough
CT: control target
= control target key end

     0   :  { %10 = vsyncpa [#allocation4], 0  ;;  %s1376_s0 = inlined_call_operand.hbm [shape: bf16[128,128], index: 0, kind: input, shape index: {}]   ;;  %s1377_s1 = inlined_call_operand.hbm [shape: bf16[128,128], index: 1, kind: input, shape index: {}]   ;;  %s1378_s2 = inlined_call_operand.vmem [shape: f32[1,128], index: 2, kind: input, shape index: {}]   ;;  %s1379_s3 = inlined_call_operand.vmem [shape: f32[1,128], index: 3, kind: input, shape index: {}]   ;;  %s1380_s4 = inlined_call_operand.vmem [shape: f32[1,128], index: 4, kind: input, shape index: {}]   ;;  %s1381_s5 = inlined_call_operand.hbm [shape: bf16[128,128], index: 5, kind: output, shape index: {}]  }
   0x1   :  { %11 = vsyncpa [#allocation7], 0 }
   0x2   :  { %12 = vsyncpa [#allocation5], 0  ;;  %s1040_s18 = smov [#allocation3]   ;;  %s968_s22 = scalar_lea.hbm %s1376_s0, 1024 }
   0x3   :  { %s18_s19 = sshll.u32 %s1040_s18, 4  ;;  %p969_p0 = scmp.ne.s32.totalorder %s1376_s0, %s968_s22  ;;  %s19_s19 = int_to_ptr.vmem [resolvable:$true] %s18_s19 }
   0x4   :  { %p972_p1 = scmp.lt.u32.totalorder %s968_s22, %s1376_s0 }
   0x6   :  { %p974_p2 = pnand %p972_p1, %p969_p0 }
   0x8   :  { %977 = shalt.err (!%p974_p2)
}
   0x9   :  { %s978_s27 = scalar_lea.vmem %s19_s19, 1024  ;;  %p983_p4 = scmp.lt.s32.totalorder %s19_s19, %s19_s19 }
   0xa   :  { %p979_p3 = scmp.ne.s32.totalorder %s19_s19, %s978_s27  ;;  %p984_p5 = scmp.lt.s32.totalorder %s978_s27, %s978_s27 }
   0xc   :  { %p985_p6 = por %p984_p5, %p983_p4 }
   0xe   :  { %p986_p7 = pnand %p985_p6, %p979_p3 }
  0x10   :  { %989 = shalt.err (!%p986_p7)
}
  0x11   :  { %s1041_s28 = smov 64   ;;  %s1042_s29 = smov 4  }
  0x12   :  { %24 = dma.hbm_to_vmem [thread:$0]  %s1376_s0, 1024, %s19_s19, [#allocation4], %s1041_s28, %s1041_s28, %s1042_s29  }
  0x13   :  { %s1043_s7 = smov [#allocation6]   ;;  %s990_s11 = scalar_lea.hbm %s1377_s1, 1024 }
  0x14   :  { %s30_s8 = sshll.u32 %s1043_s7, 4  ;;  %p991_p8 = scmp.ne.s32.totalorder %s1377_s1, %s990_s11  ;;  %s31_s8 = int_to_ptr.vmem [resolvable:$true] %s30_s8 }
  0x15   :  { %p994_p9 = scmp.lt.u32.totalorder %s990_s11, %s1377_s1 }
  0x17   :  { %p996_p10 = pnand %p994_p9, %p991_p8 }
  0x19   :  { %999 = shalt.err (!%p996_p10)
}
  0x1a   :  { %s1000_s16 = scalar_lea.vmem %s31_s8, 1024  ;;  %p1005_p12 = scmp.lt.s32.totalorder %s31_s8, %s31_s8 }
  0x1b   :  { %p1001_p11 = scmp.ne.s32.totalorder %s31_s8, %s1000_s16  ;;  %p1006_p13 = scmp.lt.s32.totalorder %s1000_s16, %s1000_s16 }
  0x1d   :  { %p1007_p0 = por %p1006_p13, %p1005_p12 }
  0x1f   :  { %p1008_p1 = pnand %p1007_p0, %p1001_p11 }
  0x21   :  { %1011 = shalt.err (!%p1008_p1)
}
  0x22   :  { %36 = dma.hbm_to_vmem [thread:$0]  %s1377_s1, 1024, %s31_s8, [#allocation7], %s1041_s28, %s1041_s28, %s1042_s29  }
  0x23   :  { %1034 = dma.done.wait [#allocation4], 1024  }
  0x24   :  { %1035 = vsyncadd [#allocation4], 4294966272 }
  0x25   :  { %1036 = dma.done.wait [#allocation7], 1024  }
  0x26   :  { %1037 = vsyncadd [#allocation7], 4294966272  ;;  %v920_v0 = vld [vmem:[#allocation6] sm:$0xff]   ;;  %v921_v1 = vld [vmem:[#allocation6 + $0x8] sm:$0xff]  }
  0x27   :  { %867 = vmatprep.subr.bf16.mxu0 %v920_v0  ;;  %899 = vmatprep.subr.bf16.mxu1 %v920_v0  ;;  %v922_v2 = vld [vmem:[#allocation6 + $0x10] sm:$0xff]   ;;  %v923_v3 = vld [vmem:[#allocation6 + $0x18] sm:$0xff]   ;;  %v928_v4 = vld [vmem:[#allocation3] sm:$0xff]  }
  0x28   :  { %868 = vmatpush3.bf16.msra.mxu0 %v920_v0  ;;  %907 = vmatpush3.bf16.msra.mxu1 %v920_v0  ;;  %v929_v5 = vld [vmem:[#allocation3 + $0x20] sm:$0xff]   ;;  %v925_v7 = vld [vmem:[#allocation6 + $0x28] sm:$0xff]   ;;  %v926_v8 = vld [vmem:[#allocation6 + $0x30] sm:$0xff]  }
  0x29   :  { %869 = vmatprep.subr.bf16.mxu0 %v921_v1  ;;  %900 = vmatprep.subr.bf16.mxu1 %v921_v1  ;;  %v924_v6 = vld [vmem:[#allocation6 + $0x20] sm:$0xff]   ;;  %v927_v9 = vld [vmem:[#allocation6 + $0x38] sm:$0xff]   ;;  %v930_v10 = vld [vmem:[#allocation3 + $0x8] sm:$0xff]  }
  0x2a   :  { %883 = vmatprep.mubr.bf16.mxu0 %v928_v4  ;;  %891 = vmatprep.mubr.bf16.mxu1 %v929_v5  ;;  %v931_v11 = vld [vmem:[#allocation3 + $0x28] sm:$0xff]   ;;  %v932_v12 = vld [vmem:[#allocation3 + $0x10] sm:$0xff]   ;;  %v933_v14 = vld [vmem:[#allocation3 + $0x18] sm:$0xff]  }
  0x2b   :  { %v934_v13 = vld [vmem:[#allocation3 + $0x30] sm:$0xff]   ;;  %v935_v15 = vld [vmem:[#allocation3 + $0x38] sm:$0xff]   ;;  %v769_v16 = vld [vmem:[%s1378_s2] ss:$0 sm:$0xff] }
  0x2c   :  { %870 = vmatpush3.bf16.msra.mxu0 %v921_v1  ;;  %908 = vmatpush3.bf16.msra.mxu1 %v921_v1  ;;  %v410_v1 = vlaneseq }
  0x2d   :  { %871 = vmatprep.subr.bf16.mxu0 %v922_v2  ;;  %901 = vmatprep.subr.bf16.mxu1 %v922_v2 }
  0x30   :  { %872 = vmatpush3.bf16.msra.mxu0 %v922_v2  ;;  %909 = vmatpush3.bf16.msra.mxu1 %v922_v2  ;;  %v1180_v2 = vand.u32 127, %v410_v1 }
  0x31   :  { %873 = vmatprep.subr.bf16.mxu0 %v923_v3  ;;  %902 = vmatprep.subr.bf16.mxu1 %v923_v3 }
  0x32   :  { %vm412_vm0 = vcmp.lt.s32.totalorder %v1180_v2, 32 }
  0x34   :  { %874 = vmatpush3.bf16.msra.mxu0 %v923_v3  ;;  %910 = vmatpush3.bf16.msra.mxu1 %v923_v3 }
  0x35   :  { %875 = vmatprep.subr.bf16.mxu0 %v924_v6  ;;  %903 = vmatprep.subr.bf16.mxu1 %v924_v6 }
  0x38   :  { %876 = vmatpush3.bf16.msra.mxu0 %v924_v6  ;;  %911 = vmatpush3.bf16.msra.mxu1 %v924_v6 }
  0x39   :  { %877 = vmatprep.subr.bf16.mxu0 %v925_v7  ;;  %904 = vmatprep.subr.bf16.mxu1 %v925_v7 }
  0x3c   :  { %878 = vmatpush3.bf16.msra.mxu0 %v925_v7  ;;  %912 = vmatpush3.bf16.msra.mxu1 %v925_v7 }
  0x3d   :  { %879 = vmatprep.subr.bf16.mxu0 %v926_v8  ;;  %905 = vmatprep.subr.bf16.mxu1 %v926_v8 }
  0x40   :  { %880 = vmatpush3.bf16.msra.mxu0 %v926_v8  ;;  %913 = vmatpush3.bf16.msra.mxu1 %v926_v8 }
  0x41   :  { %881 = vmatprep.subr.bf16.mxu0 %v927_v9  ;;  %906 = vmatprep.subr.bf16.mxu1 %v927_v9 }
  0x44   :  { %882 = vmatpush3.bf16.msra.mxu0 %v927_v9  ;;  %914 = vmatpush3.bf16.msra.mxu1 %v927_v9 }
  0x47   :  { %884 = vmatmul.mubr.bf16.vlgmr.msra.gmra.mrb[0].mxu0 %v930_v10  ;;  %892 = vmatmul.mubr.bf16.vlgmr.msra.gmra.mrb[0].mxu1 %v931_v11 }
  0x48   :  { %887 = vmatprep.mubr.bf16.mxu0 %v932_v12  ;;  %895 = vmatprep.mubr.bf16.mxu1 %v934_v13 }
  0x4f   :  { %888 = vmatmul.mubr.bf16.gmra.mrb[4].mxu0 %v933_v14  ;;  %896 = vmatmul.mubr.bf16.gmra.mrb[4].mxu1 %v935_v15 }
 0x11a   :  { %v885_v17 = vpop.f32.mrb[0].mxu0  ;;  %v893_v18 = vpop.f32.mrb[0].mxu1 }
 0x11b   :  { %v1108_v19 = vadd.f32 %v885_v17, %v769_v16  ;;  %v1110_v20 = vadd.f32 %v893_v18, %v769_v16  ;;  %v217_v21 = vpop.f32.mrb[1].mxu0  ;;  %v249_v22 = vpop.f32.mrb[1].mxu1 }
 0x11c   :  { %v886_v23 = vpop.f32.mrb[2].mxu0  ;;  %v894_v24 = vpop.f32.mrb[2].mxu1  ;;  %v1114_v27 = vadd.f32 %v769_v16, %v217_v21  ;;  %v1121_v32 = vadd.f32 %v769_v16, %v249_v22 }
 0x11d   :  { %v396_v25 = vmax.f32 %v1108_v19, 0.0  ;;  %v404_v26 = vmax.f32 %v1110_v20, 0.0  ;;  %v1116_v28 = vadd.f32 %v886_v23, %v769_v16  ;;  %v220_v29 = vpop.f32.mrb[3].mxu0  ;;  %v252_v30 = vpop.f32.mrb[3].mxu1  ;;  %v1124_v34 = vadd.f32 %v894_v24, %v769_v16 }
 0x11e   :  { %v394_v31 = vmax.f32 %v1114_v27, 0.0  ;;  %v402_v41 = vmax.f32 %v1121_v32, 0.0  ;;  %v1130_v43 = vadd.f32 %v769_v16, %v220_v29  ;;  %v1132_v44 = vadd.f32 %v769_v16, %v252_v30 }
 0x11f   :  { %433 = vadd.xlane.f32.xlu0 %v404_v26  ;;  %417 = vadd.xlane.f32.xlu1 %v396_v25  ;;  %v397_v33 = vmax.f32 %v1116_v28, 0.0  ;;  %v405_v42 = vmax.f32 %v1124_v34, 0.0 }
 0x120   :  { %v395_v49 = vmax.f32 %v1130_v43, 0.0  ;;  %v403_v50 = vmax.f32 %v1132_v44, 0.0 }
 0x122   :  { %v889_v35 = vpop.f32.mrb[4].mxu0  ;;  %v897_v36 = vpop.f32.mrb[4].mxu1 }
 0x123   :  { %413 = vadd.xlane.f32.xlu0 %v394_v31  ;;  %419 = vadd.xlane.f32.xlu1 %v397_v33  ;;  %v233_v37 = vpop.f32.mrb[5].mxu0  ;;  %v265_v38 = vpop.f32.mrb[5].mxu1  ;;  %v1134_v47 = vadd.f32 %v889_v35, %v769_v16  ;;  %v1166_v61 = vadd.f32 %v897_v36, %v769_v16 }
 0x124   :  { %v890_v39 = vpop.f32.mrb[6].mxu0  ;;  %v898_v40 = vpop.f32.mrb[6].mxu1  ;;  %v1146_v53 = vadd.f32 %v769_v16, %v233_v37  ;;  %v1154_v55 = vadd.f32 %v769_v16, %v265_v38 }
 0x125   :  { %v236_v45 = vpop.f32.mrb[7].mxu0  ;;  %v268_v46 = vpop.f32.mrb[7].mxu1  ;;  %v1136_v48 = vadd.f32 %v890_v39, %v769_v16  ;;  %v400_v51 = vmax.f32 %v1134_v47, 0.0  ;;  %v1168_v62 = vadd.f32 %v898_v40, %v769_v16  ;;  %v408_v63 = vmax.f32 %v1166_v61, 0.0 }
 0x126   :  { %v1148_v54 = vadd.f32 %v769_v16, %v236_v45  ;;  %v1156_v56 = vadd.f32 %v769_v16, %v268_v46  ;;  %v398_v57 = vmax.f32 %v1146_v53, 0.0  ;;  %v406_v59 = vmax.f32 %v1154_v55, 0.0 }
 0x127   :  { %429 = vadd.xlane.f32.xlu0 %v402_v41  ;;  %435 = vadd.xlane.f32.xlu1 %v405_v42  ;;  %v401_v52 = vmax.f32 %v1136_v48, 0.0  ;;  %v409_v0 = vmax.f32 %v1168_v62, 0.0 }
 0x128   :  { %v399_v58 = vmax.f32 %v1148_v54, 0.0  ;;  %v407_v60 = vmax.f32 %v1156_v56, 0.0 }
 0x12b   :  { %431 = vadd.xlane.f32.xlu1 %v403_v50  ;;  %415 = vadd.xlane.f32.xlu0 %v395_v49 }
 0x12f   :  { %425 = vadd.xlane.f32.xlu0 %v400_v51  ;;  %427 = vadd.xlane.f32.xlu1 %v401_v52 }
 0x133   :  { %421 = vadd.xlane.f32.xlu0 %v398_v57  ;;  %423 = vadd.xlane.f32.xlu1 %v399_v58 }
 0x137   :  { %437 = vadd.xlane.f32.xlu0 %v406_v59  ;;  %439 = vadd.xlane.f32.xlu1 %v407_v60 }
 0x13b   :  { %441 = vadd.xlane.f32.xlu0 %v408_v63  ;;  %443 = vadd.xlane.f32.xlu1 %v409_v0 }
 0x1ac   :  { %v434_v3 = vpop.xlane.xlu0 %433  ;;  %v418_v4 = vpop.xlane.xlu1 %417 }
 0x1ad   :  { %v455_v5 = vmul.f32 0.03125, %v434_v3  ;;  %v447_v6 = vmul.f32 0.03125, %v418_v4 }
 0x1af   :  { %v471_v7 = vsub.f32 %v404_v26, %v455_v5  ;;  %v463_v8 = vsub.f32 %v396_v25, %v447_v6 }
 0x1b0   :  { %v414_v9 = vpop.xlane.xlu0 %413  ;;  %v420_v10 = vpop.xlane.xlu1 %419 }
 0x1b1   :  { %v445_v11 = vmul.f32 0.03125, %v414_v9  ;;  %v448_v12 = vmul.f32 0.03125, %v420_v10  ;;  %v1187_v13 = vsel %vm412_vm0, %v463_v8, 0.0  ;;  %v1195_v17 = vsel %vm412_vm0, %v471_v7, 0.0 }
 0x1b2   :  { %v497_v14 = vmul.f32 %v1187_v13, %v1187_v13  ;;  %v505_v23 = vmul.f32 %v1195_v17, %v1195_v17 }
 0x1b3   :  { %v461_v15 = vsub.f32 %v394_v31, %v445_v11  ;;  %v464_v16 = vsub.f32 %v397_v33, %v448_v12 }
 0x1b4   :  { %v430_v18 = vpop.xlane.xlu0 %429  ;;  %v436_v19 = vpop.xlane.xlu1 %435  ;;  %515 = vadd.xlane.f32.xlu0 %v497_v14 }
 0x1b5   :  { %v453_v20 = vmul.f32 0.03125, %v430_v18  ;;  %v456_v21 = vmul.f32 0.03125, %v436_v19  ;;  %v1199_v22 = vsel %vm412_vm0, %v464_v16, 0.0  ;;  %v1207_v27 = vsel %vm412_vm0, %v461_v15, 0.0 }
 0x1b6   :  { %v498_v24 = vmul.f32 %v1199_v22, %v1199_v22  ;;  %v495_v33 = vmul.f32 %v1207_v27, %v1207_v27 }
 0x1b7   :  { %v469_v25 = vsub.f32 %v402_v41, %v453_v20  ;;  %v472_v26 = vsub.f32 %v405_v42, %v456_v21 }
 0x1b8   :  { %v432_v28 = vpop.xlane.xlu1 %431  ;;  %v416_v29 = vpop.xlane.xlu0 %415  ;;  %531 = vadd.xlane.f32.xlu0 %v505_v23  ;;  %517 = vadd.xlane.f32.xlu1 %v498_v24 }
 0x1b9   :  { %v454_v30 = vmul.f32 0.03125, %v432_v28  ;;  %v446_v31 = vmul.f32 0.03125, %v416_v29  ;;  %v1211_v32 = vsel %vm412_vm0, %v472_v26, 0.0  ;;  %v1223_v37 = vsel %vm412_vm0, %v469_v25, 0.0 }
 0x1ba   :  { %v506_v34 = vmul.f32 %v1211_v32, %v1211_v32  ;;  %v503_v44 = vmul.f32 %v1223_v37, %v1223_v37 }
 0x1bb   :  { %v470_v35 = vsub.f32 %v403_v50, %v454_v30  ;;  %v462_v36 = vsub.f32 %v395_v49, %v446_v31 }
 0x1bc   :  { %v426_v38 = vpop.xlane.xlu0 %425  ;;  %511 = vadd.xlane.f32.xlu0 %v495_v33  ;;  %v428_v39 = vpop.xlane.xlu1 %427  ;;  %533 = vadd.xlane.f32.xlu1 %v506_v34 }
 0x1bd   :  { %v451_v40 = vmul.f32 0.03125, %v426_v38  ;;  %v452_v41 = vmul.f32 0.03125, %v428_v39  ;;  %v1227_v42 = vsel %vm412_vm0, %v462_v36, 0.0  ;;  %v1239_v49 = vsel %vm412_vm0, %v470_v35, 0.0 }
 0x1be   :  { %v496_v43 = vmul.f32 %v1227_v42, %v1227_v42  ;;  %v504_v48 = vmul.f32 %v1239_v49, %v1239_v49 }
 0x1bf   :  { %v467_v45 = vsub.f32 %v400_v51, %v451_v40  ;;  %v468_v46 = vsub.f32 %v401_v52, %v452_v41 }
 0x1c0   :  { %527 = vadd.xlane.f32.xlu0 %v503_v44  ;;  %v422_v50 = vpop.xlane.xlu0 %421  ;;  %513 = vadd.xlane.f32.xlu1 %v496_v43  ;;  %v424_v1 = vpop.xlane.xlu1 %423 }
 0x1c1   :  { %v449_v3 = vmul.f32 0.03125, %v422_v50  ;;  %v450_v4 = vmul.f32 0.03125, %v424_v1  ;;  %v1243_v5 = vsel %vm412_vm0, %v467_v45, 0.0  ;;  %v1255_v6 = vsel %vm412_vm0, %v468_v46, 0.0 }
 0x1c2   :  { %v501_v47 = vmul.f32 %v1243_v5, %v1243_v5  ;;  %v502_v54 = vmul.f32 %v1255_v6, %v1255_v6 }
 0x1c3   :  { %v465_v51 = vsub.f32 %v398_v57, %v449_v3  ;;  %v466_v52 = vsub.f32 %v399_v58, %v450_v4 }
 0x1c4   :  { %523 = vadd.xlane.f32.xlu0 %v501_v47  ;;  %v438_v7 = vpop.xlane.xlu0 %437  ;;  %529 = vadd.xlane.f32.xlu1 %v504_v48  ;;  %v440_v8 = vpop.xlane.xlu1 %439  ;;  %v1307_v47 = vld [vmem:[%s1379_s3] ss:$0 sm:$0xff]  ;;  %s1044_s3 = smov [#allocation8]  }
 0x1c5   :  { %v457_v9 = vmul.f32 0.03125, %v438_v7  ;;  %v458_v10 = vmul.f32 0.03125, %v440_v8  ;;  %v1259_v11 = vsel %vm412_vm0, %v465_v51, 0.0  ;;  %v1271_v12 = vsel %vm412_vm0, %v466_v52, 0.0 }
 0x1c6   :  { %v499_v53 = vmul.f32 %v1259_v11, %v1259_v11  ;;  %v500_v56 = vmul.f32 %v1271_v12, %v1271_v12 }
 0x1c7   :  { %v473_v57 = vsub.f32 %v406_v59, %v457_v9  ;;  %v474_v58 = vsub.f32 %v407_v60, %v458_v10 }
 0x1c8   :  { %519 = vadd.xlane.f32.xlu0 %v499_v53  ;;  %v442_v14 = vpop.xlane.xlu0 %441  ;;  %525 = vadd.xlane.f32.xlu1 %v502_v54  ;;  %v444_v15 = vpop.xlane.xlu1 %443 }
 0x1c9   :  { %v459_v16 = vmul.f32 0.03125, %v442_v14  ;;  %v460_v18 = vmul.f32 0.03125, %v444_v15  ;;  %v1275_v19 = vsel %vm412_vm0, %v473_v57, 0.0  ;;  %v1287_v20 = vsel %vm412_vm0, %v474_v58, 0.0  ;;  %v1314_v57 = vld [vmem:[%s1380_s4] ss:$0 sm:$0xff] }
 0x1ca   :  { %v507_v55 = vmul.f32 %v1275_v19, %v1275_v19  ;;  %v508_v61 = vmul.f32 %v1287_v20, %v1287_v20  ;;  %s738_s4 = sshll.u32 %s1044_s3, 4  ;;  %s739_s4 = int_to_ptr.vmem [resolvable:$true] %s738_s4 }
 0x1cb   :  { %v475_v59 = vsub.f32 %v408_v63, %v459_v16  ;;  %v476_v60 = vsub.f32 %v409_v0, %v460_v18  ;;  %s1012_s22 = scalar_lea.vmem %s739_s4, 1024  ;;  %p1017_p3 = scmp.lt.s32.totalorder %s739_s4, %s739_s4 }
 0x1cc   :  { %535 = vadd.xlane.f32.xlu0 %v507_v55  ;;  %521 = vadd.xlane.f32.xlu1 %v500_v56  ;;  %p1013_p2 = scmp.ne.s32.totalorder %s739_s4, %s1012_s22  ;;  %p1018_p4 = scmp.lt.s32.totalorder %s1012_s22, %s1012_s22 }
 0x1cd   :  { %v1291_v21 = vsel %vm412_vm0, %v475_v59, 0.0  ;;  %v1299_v62 = vsel %vm412_vm0, %v476_v60, 0.0 }
 0x1ce   :  { %v509_v23 = vmul.f32 %v1291_v21, %v1291_v21  ;;  %v510_v63 = vmul.f32 %v1299_v62, %v1299_v62  ;;  %p1019_p5 = por %p1018_p4, %p1017_p3 }
 0x1d0   :  { %539 = vadd.xlane.f32.xlu0 %v509_v23  ;;  %537 = vadd.xlane.f32.xlu1 %v508_v61  ;;  %p1020_p6 = pnand %p1019_p5, %p1013_p2 }
 0x1d4   :  { %541 = vadd.xlane.f32.xlu1 %v510_v63 }
 0x241   :  { %v516_v0 = vpop.xlane.xlu0 %515 }
 0x242   :  { %v545_v24 = vmul.f32 0.03125, %v516_v0 }
 0x244   :  { %v561_v25 = vadd.f32 1e-05, %v545_v24 }
 0x245   :  { %v532_v26 = vpop.xlane.xlu0 %531  ;;  %v518_v28 = vpop.xlane.xlu1 %517 }
 0x246   :  { %936 = vrsqrt.f32 %v561_v25  ;;  %v553_v29 = vmul.f32 0.03125, %v532_v26  ;;  %v546_v30 = vmul.f32 0.03125, %v518_v28 }
 0x248   :  { %v569_v31 = vadd.f32 1e-05, %v553_v29  ;;  %v562_v33 = vadd.f32 1e-05, %v546_v30 }
 0x249   :  { %v512_v34 = vpop.xlane.xlu0 %511  ;;  %v534_v2 = vpop.xlane.xlu1 %533 }
 0x24a   :  { %938 = vrsqrt.f32 %v569_v31  ;;  %v543_v35 = vmul.f32 0.03125, %v512_v34  ;;  %v554_v36 = vmul.f32 0.03125, %v534_v2 }
 0x24b   :  { %940 = vrsqrt.f32 %v562_v33 }
 0x24c   :  { %v559_v38 = vadd.f32 1e-05, %v543_v35  ;;  %v570_v39 = vadd.f32 1e-05, %v554_v36 }
 0x24d   :  { %v528_v40 = vpop.xlane.xlu0 %527  ;;  %v514_v41 = vpop.xlane.xlu1 %513 }
 0x24e   :  { %942 = vrsqrt.f32 %v559_v38  ;;  %v551_v44 = vmul.f32 0.03125, %v528_v40  ;;  %v544_v43 = vmul.f32 0.03125, %v514_v41 }
 0x24f   :  { %944 = vrsqrt.f32 %v570_v39 }
 0x250   :  { %v937_v45 = vpop.eup %936  ;;  %v567_v46 = vadd.f32 1e-05, %v551_v44  ;;  %v560_v50 = vadd.f32 1e-05, %v544_v43 }
 0x251   :  { %v593_v1 = vmul.f32 %v937_v45, %v1187_v13  ;;  %v524_v3 = vpop.xlane.xlu0 %523  ;;  %v530_v4 = vpop.xlane.xlu1 %529 }
 0x252   :  { %946 = vrsqrt.f32 %v567_v46  ;;  %v549_v48 = vmul.f32 0.03125, %v524_v3  ;;  %v552_v51 = vmul.f32 0.03125, %v530_v4 }
 0x253   :  { %948 = vrsqrt.f32 %v560_v50  ;;  %v616_v10 = vmul.f32 %v1307_v47, %v593_v1 }
 0x254   :  { %v939_v52 = vpop.eup %938  ;;  %v565_v7 = vadd.f32 1e-05, %v549_v48  ;;  %v568_v8 = vadd.f32 1e-05, %v552_v51 }
 0x255   :  { %v941_v9 = vpop.eup %940  ;;  %v601_v53 = vmul.f32 %v939_v52, %v1195_v17  ;;  %v520_v13 = vpop.xlane.xlu0 %519  ;;  %v639_v17 = vadd.f32 %v1314_v57, %v616_v10 }
 0x256   :  { %v526_v54 = vpop.xlane.xlu1 %525  ;;  %v594_v58 = vmul.f32 %v941_v9, %v1199_v22  ;;  %950 = vrsqrt.f32 %v565_v7  ;;  %v547_v14 = vmul.f32 0.03125, %v520_v13 }
 0x257   :  { %v550_v15 = vmul.f32 0.03125, %v526_v54  ;;  %952 = vrsqrt.f32 %v568_v8  ;;  %v624_v60 = vmul.f32 %v1307_v47, %v601_v53 }
 0x258   :  { %v943_v16 = vpop.eup %942  ;;  %v617_v18 = vmul.f32 %v1307_v47, %v594_v58  ;;  %v563_v55 = vadd.f32 1e-05, %v547_v14 }
 0x259   :  { %v566_v56 = vadd.f32 1e-05, %v550_v15  ;;  %v945_v59 = vpop.eup %944  ;;  %v591_v23 = vmul.f32 %v943_v16, %v1207_v27  ;;  %v536_v61 = vpop.xlane.xlu0 %535  ;;  %v647_v33 = vadd.f32 %v1314_v57, %v624_v60 }
 0x25a   :  { %v522_v63 = vpop.xlane.xlu1 %521  ;;  %v640_v22 = vadd.f32 %v1314_v57, %v617_v18  ;;  %v602_v0 = vmul.f32 %v945_v59, %v1211_v32  ;;  %954 = vrsqrt.f32 %v563_v55  ;;  %v555_v24 = vmul.f32 0.03125, %v536_v61 }
 0x25b   :  { %956 = vrsqrt.f32 %v566_v56  ;;  %v548_v25 = vmul.f32 0.03125, %v522_v63  ;;  %v614_v27 = vmul.f32 %v1307_v47, %v591_v23 }
 0x25c   :  { %v947_v26 = vpop.eup %946  ;;  %v812_v28 = vpack.c.bf16 %v640_v22, %v639_v17  ;;  %v625_v29 = vmul.f32 %v1307_v47, %v602_v0  ;;  %v571_v30 = vadd.f32 1e-05, %v555_v24 }
 0x25d   :  { %v949_v31 = vpop.eup %948  ;;  %v599_v34 = vmul.f32 %v947_v26, %v1223_v37  ;;  %v564_v2 = vadd.f32 1e-05, %v548_v25  ;;  %v540_v35 = vpop.xlane.xlu0 %539  ;;  %v637_v37 = vadd.f32 %v1314_v57, %v614_v27 }
 0x25e   :  { %v538_v36 = vpop.xlane.xlu1 %537  ;;  %844 = vst [vmem:[#allocation8 + $0x8] sm:$0xff] %v812_v28   ;;  %v648_v32 = vadd.f32 %v1314_v57, %v625_v29  ;;  %v592_v38 = vmul.f32 %v949_v31, %v1227_v42  ;;  %958 = vrsqrt.f32 %v571_v30  ;;  %v557_v39 = vmul.f32 0.03125, %v540_v35 }
 0x25f   :  { %960 = vrsqrt.f32 %v564_v2  ;;  %v556_v40 = vmul.f32 0.03125, %v538_v36  ;;  %v622_v50 = vmul.f32 %v1307_v47, %v599_v34 }
 0x260   :  { %v951_v41 = vpop.eup %950  ;;  %v832_v44 = vpack.c.bf16 %v648_v32, %v647_v33  ;;  %v615_v43 = vmul.f32 %v1307_v47, %v592_v38  ;;  %v573_v45 = vadd.f32 1e-05, %v557_v39 }
 0x261   :  { %v953_v46 = vpop.eup %952  ;;  %v597_v1 = vmul.f32 %v951_v41, %v1243_v5  ;;  %v572_v3 = vadd.f32 1e-05, %v556_v40  ;;  %v645_v53 = vadd.f32 %v1314_v57, %v622_v50 }
 0x262   :  { %v542_v4 = vpop.xlane.xlu1 %541  ;;  %848 = vst [vmem:[#allocation8 + $0x28] sm:$0xff] %v832_v44   ;;  %v638_v42 = vadd.f32 %v1314_v57, %v615_v43  ;;  %v600_v48 = vmul.f32 %v953_v46, %v1239_v49  ;;  %962 = vrsqrt.f32 %v573_v45 }
 0x263   :  { %v558_v51 = vmul.f32 0.03125, %v542_v4  ;;  %964 = vrsqrt.f32 %v572_v3  ;;  %v620_v5 = vmul.f32 %v1307_v47, %v597_v1 }
 0x264   :  { %v955_v52 = vpop.eup %954  ;;  %v807_v7 = vpack.c.bf16 %v638_v42, %v637_v37  ;;  %v623_v8 = vmul.f32 %v1307_v47, %v600_v48 }
 0x265   :  { %v574_v9 = vadd.f32 1e-05, %v558_v51  ;;  %v957_v10 = vpop.eup %956  ;;  %v595_v54 = vmul.f32 %v955_v52, %v1259_v11  ;;  %v643_v18 = vadd.f32 %v1314_v57, %v620_v5 }
 0x266   :  { %808 = vst [vmem:[#allocation8] sm:$0xff] %v807_v7   ;;  %v646_v13 = vadd.f32 %v1314_v57, %v623_v8  ;;  %v598_v49 = vmul.f32 %v957_v10, %v1255_v6 }
 0x267   :  { %966 = vrsqrt.f32 %v574_v9  ;;  %v618_v55 = vmul.f32 %v1307_v47, %v595_v54 }
 0x268   :  { %v959_v58 = vpop.eup %958  ;;  %v827_v14 = vpack.c.bf16 %v646_v13, %v645_v53  ;;  %v621_v15 = vmul.f32 %v1307_v47, %v598_v49 }
 0x269   :  { %v961_v16 = vpop.eup %960  ;;  %v603_v59 = vmul.f32 %v959_v58, %v1275_v19  ;;  %v641_v63 = vadd.f32 %v1314_v57, %v618_v55 }
 0x26a   :  { %847 = vst [vmem:[#allocation8 + $0x20] sm:$0xff] %v827_v14   ;;  %v644_v56 = vadd.f32 %v1314_v57, %v621_v15  ;;  %v596_v17 = vmul.f32 %v961_v16, %v1271_v12 }
 0x26b   :  { %v626_v22 = vmul.f32 %v1307_v47, %v603_v59 }
 0x26c   :  { %v963_v11 = vpop.eup %962  ;;  %v822_v60 = vpack.c.bf16 %v644_v56, %v643_v18  ;;  %v619_v6 = vmul.f32 %v1307_v47, %v596_v17 }
 0x26d   :  { %v965_v23 = vpop.eup %964  ;;  %v605_v61 = vmul.f32 %v963_v11, %v1291_v21  ;;  %v649_v29 = vadd.f32 %v1314_v57, %v626_v22 }
 0x26e   :  { %846 = vst [vmem:[#allocation8 + $0x18] sm:$0xff] %v822_v60   ;;  %v642_v0 = vadd.f32 %v1314_v57, %v619_v6  ;;  %v604_v24 = vmul.f32 %v965_v23, %v1287_v20 }
 0x26f   :  { %v628_v26 = vmul.f32 %v1307_v47, %v605_v61 }
 0x270   :  { %v817_v19 = vpack.c.bf16 %v642_v0, %v641_v63  ;;  %v627_v12 = vmul.f32 %v1307_v47, %v604_v24 }
 0x271   :  { %v967_v25 = vpop.eup %966  ;;  %v651_v20 = vadd.f32 %v1314_v57, %v628_v26 }
 0x272   :  { %v606_v28 = vmul.f32 %v967_v25, %v1299_v62  ;;  %845 = vst [vmem:[#allocation8 + $0x10] sm:$0xff] %v817_v19   ;;  %v650_v21 = vadd.f32 %v1314_v57, %v627_v12 }
 0x274   :  { %v629_v30 = vmul.f32 %v1307_v47, %v606_v28  ;;  %v837_v31 = vpack.c.bf16 %v650_v21, %v649_v29 }
 0x276   :  { %v652_v33 = vadd.f32 %v1314_v57, %v629_v30  ;;  %849 = vst [vmem:[#allocation8 + $0x30] sm:$0xff] %v837_v31  }
 0x278   :  { %v842_v27 = vpack.c.bf16 %v652_v33, %v651_v20 }
 0x27a   :  { %850 = vst [vmem:[#allocation8 + $0x38] sm:$0xff] %v842_v27  }
 0x27b   :  { %1023 = shalt.err (!%p1020_p6)
}
 0x27c   :  { %s1024_s25 = scalar_lea.hbm %s1381_s5, 1024 }
 0x27d   :  { %p1025_p7 = scmp.ne.s32.totalorder %s1381_s5, %s1024_s25  ;;  %p1028_p8 = scmp.lt.u32.totalorder %s1024_s25, %s1381_s5 }
 0x27f   :  { %p1030_p9 = pnand %p1028_p8, %p1025_p7 }
 0x281   :  { %1033 = shalt.err (!%p1030_p9)
}
 0x282   :  { %744 = dma.vmem_to_hbm [thread:$0]  %s739_s4, 1024, %s1381_s5, [#allocation5], %s1041_s28, %s1041_s28, %s1042_s29  }
 0x283   :  { %1038 = dma.done.wait [#allocation5], 1024  }
 0x284   :  { %1039 = vsyncadd [#allocation5], 4294966272 }
 0x285   :  { %748 = vsyncpa [#allocation4], 1 }
 0x286   :  { %749 = vsyncpa [#allocation7], 1 }
 0x287   :  { %750 = vsyncpa [#allocation5], 1 }

</bundles_post_ra>
